<compile_context>
chip_gen: v7x
topology: tpu7x:2x2x1
jax: 0.10.0
libtpu: 0.0.40
codegen_flags: <defaults>
</compile_context>

<pallas_src>
import math
import jax
import jax.numpy as jnp
from jax import lax
from jax.experimental import pallas as pl
from jax.experimental.pallas import tpu as pltpu

# ----------------------------- model dims -----------------------------------
B = 2          # batch
S = 8          # sequence length
D_MODEL = 32   # d_model (features)
H = 4          # number of heads
D_K = D_MODEL // H
D_FF = 64      # feed-forward hidden
EPS = 1e-6     # LayerNormalization eps (added to std, like the PyTorch code)


def _layer_norm(v, alpha, beta, d):
    # matches torch: (x - mean) / (std + eps) * alpha + beta, std is UNBIASED (N-1)
    mean = jnp.mean(v, axis=-1, keepdims=True)
    c = v - mean
    var = jnp.sum(c * c, axis=-1, keepdims=True) * (1.0 / (d - 1))
    inv = pl.reciprocal(jnp.sqrt(var) + EPS, approx=False)   # EUP, exact semantics
    return c * inv * alpha + beta


def encoder_block_kernel(bias_ref, x_ref, wqkv_ref, wo_ref, w1_ref, w2_ref,
                         p_ref, o_ref):
    x = x_ref[...]                 # (B*S, D_MODEL)

    # packed small params: row0=b1(64) | row1=b2 | row2=ln1_a | row3=ln1_b
    #                      row4=ln2_a | row5=ln2_b  (rows 1..5 padded to 64)
    p = p_ref[...]                 # (6, D_FF)
    b1 = p[0:1, :]                 # (1, 64)
    b2 = p[1:2, :D_MODEL]          # (1, 32)
    a1 = p[2:3, :D_MODEL]
    g1 = p[3:4, :D_MODEL]
    a2 = p[4:5, :D_MODEL]
    g2 = p[5:6, :D_MODEL]

    # ---------------- residual connection #1: self attention ----------------
    ln1 = _layer_norm(x, a1, g1, D_MODEL)

    # fused QKV projection; 1/sqrt(d_k) already folded into the wq columns
    qkv = jnp.dot(ln1, wqkv_ref[...], preferred_element_type=jnp.float32)   # (BS, 3D)
    q = qkv[:, 0:D_MODEL]
    k = qkv[:, D_MODEL:2 * D_MODEL]
    v = qkv[:, 2 * D_MODEL:3 * D_MODEL]
    wo = wo_ref[...]

    # scores for all (b, h) tiles -- contraction on last dims, NO explicit kh.T
    dn = (((1,), (1,)), ((), ()))
    tiles = []
    for b in range(B):                       # static unroll (B=2)
        r0 = b * S
        for hh in range(H):                  # static unroll (H=4)
            c0 = hh * D_K
            qh = q[r0:r0 + S, c0:c0 + D_K]   # (S, D_K)
            kh = k[r0:r0 + S, c0:c0 + D_K]
            tiles.append(lax.dot_general(qh, kh, dn,
                                         preferred_element_type=jnp.float32))
    # stack all 8 (S,S) score tiles along sublanes and add the precomputed
    # additive mask bias in one shot
    scores_all = jnp.concatenate(tiles, axis=0) + bias_ref[...]    # (B*H*S, S)

    # ONE batched softmax for all head tiles
    m = jnp.max(scores_all, axis=-1, keepdims=True)
    e = jnp.exp(scores_all - m)
    ssum = jnp.sum(e, axis=-1, keepdims=True)
    probs_all = e * pl.reciprocal(ssum, approx=False)              # (B*H*S, S)

    # per-head: probs @ v, projected through matching row-slice of W_O, accumulated
    attn_rows = []
    for b in range(B):
        r0 = b * S
        acc = jnp.zeros((S, D_MODEL), jnp.float32)
        for hh in range(H):
            c0 = hh * D_K
            t0 = (b * H + hh) * S
            probs = probs_all[t0:t0 + S, :]                        # (S, S) aligned slice
            vh = v[r0:r0 + S, c0:c0 + D_K]                         # (S, D_K)
            oh = jnp.dot(probs, vh, preferred_element_type=jnp.float32)
            acc = acc + jnp.dot(oh, wo[c0:c0 + D_K, :],
                                preferred_element_type=jnp.float32)
        attn_rows.append(acc)
    attn = jnp.concatenate(attn_rows, axis=0)                      # sublane concat, cheap

    x1 = x + attn

    # ---------------- residual connection #2: feed-forward ------------------
    ln2 = _layer_norm(x1, a2, g2, D_MODEL)
    h1 = jnp.maximum(
        jnp.dot(ln2, w1_ref[...], preferred_element_type=jnp.float32) + b1, 0.0)
    ff = jnp.dot(h1, w2_ref[...], preferred_element_type=jnp.float32) + b2

    o_ref[...] = x1 + ff


# ----------------------- one-time parameter / mask prep ----------------------
def prepare_params(params):
    """Done ONCE at parameter-prep time (not in the forward path)."""
    scale = 1.0 / math.sqrt(D_K)
    # fuse Q/K/V weights into one (D_MODEL, 3*D_MODEL) operand; fold score scale into wq
    wqkv = jnp.concatenate(
        [params["wq"] * scale, params["wk"], params["wv"]], axis=1)

    def pad_ff(a):
        return jnp.pad(a, ((0, 0), (0, D_FF - a.shape[1])))

    packed = jnp.concatenate(
        [params["b1"],
         pad_ff(params["b2"]),
         pad_ff(params["ln1_a"]), pad_ff(params["ln1_b"]),
         pad_ff(params["ln2_a"]), pad_ff(params["ln2_b"])], axis=0)   # (6, 64)

    return {"wqkv": wqkv, "wo": params["wo"], "w1": params["w1"],
            "w2": params["w2"], "packed": packed}


def prepare_mask_bias(src_mask):
    """mask (B,1,1,S) 0/1 -> additive -1e9 bias, pre-stacked to (B*H*S, S)."""
    mask = src_mask.reshape(B, S).astype(jnp.float32)
    bias = jnp.where(mask < 0.5, jnp.float32(-1e9), jnp.float32(0.0))   # (B, S)
    return jnp.broadcast_to(bias[:, None, None, :], (B, H, S, S)).reshape(B * H * S, S)


# ------------------------------- forward path --------------------------------
def encoder_block_pallas(x, bias_stacked, prepped):
    """x: (B, S, D_MODEL) f32, bias_stacked: (B*H*S, S) additive mask bias."""
    xf = x.reshape(B * S, D_MODEL)                 # contiguous, free reshape

    # Single kernel invocation, no grid / no pipelining: full arrays live in VMEM.
    vmem = pl.BlockSpec(memory_space=pltpu.MemorySpace.VMEM)
    fn = pl.pallas_call(
        encoder_block_kernel,
        out_shape=jax.ShapeDtypeStruct((B * S, D_MODEL), jnp.float32),
        in_specs=[vmem] * 7,
        out_specs=vmem,
    )
    out = fn(bias_stacked, xf, prepped["wqkv"], prepped["wo"],
             prepped["w1"], prepped["w2"], prepped["packed"])
    return out.reshape(B, S, D_MODEL)


# ------------------------- pure-JAX reference --------------------------------
def encoder_block_ref(x, src_mask, p):
    mask = src_mask.reshape(B, 1, 1, S)

    def ln(v, a, b_):
        mean = jnp.mean(v, axis=-1, keepdims=True)
        std = jnp.sqrt(jnp.sum((v - mean) ** 2, axis=-1, keepdims=True) / (v.shape[-1] - 1))
        return (v - mean) / (std + EPS) * a + b_

    # self-attention sublayer
    n1 = ln(x, p["ln1_a"][0], p["ln1_b"][0])
    q = n1 @ p["wq"]
    k = n1 @ p["wk"]
    v = n1 @ p["wv"]
    q = q.reshape(B, S, H, D_K).transpose(0, 2, 1, 3)
    k = k.reshape(B, S, H, D_K).transpose(0, 2, 1, 3)
    v = v.reshape(B, S, H, D_K).transpose(0, 2, 1, 3)
    scores = (q @ jnp.swapaxes(k, -1, -2)) / math.sqrt(D_K)
    scores = jnp.where(mask == 0, -1e9, scores)
    probs = jax.nn.softmax(scores, axis=-1)
    att = (probs @ v).transpose(0, 2, 1, 3).reshape(B, S, D_MODEL) @ p["wo"]
    x1 = x + att

    # feed-forward sublayer
    n2 = ln(x1, p["ln2_a"][0], p["ln2_b"][0])
    ff = jnp.maximum(n2 @ p["w1"] + p["b1"][0], 0.0) @ p["w2"] + p["b2"][0]
    return x1 + ff


if __name__ == "__main__":
    key = jax.random.PRNGKey(0)
    keys = jax.random.split(key, 10)

    # Deterministic synthetic parameters (weights stored as (in, out) = W.T of nn.Linear).
    params = {
        "wq": jax.random.normal(keys[0], (D_MODEL, D_MODEL), jnp.float32) * 0.1,
        "wk": jax.random.normal(keys[1], (D_MODEL, D_MODEL), jnp.float32) * 0.1,
        "wv": jax.random.normal(keys[2], (D_MODEL, D_MODEL), jnp.float32) * 0.1,
        "wo": jax.random.normal(keys[3], (D_MODEL, D_MODEL), jnp.float32) * 0.1,
        "w1": jax.random.normal(keys[4], (D_MODEL, D_FF), jnp.float32) * 0.1,
        "b1": jax.random.normal(keys[5], (1, D_FF), jnp.float32) * 0.1,
        "w2": jax.random.normal(keys[6], (D_FF, D_MODEL), jnp.float32) * 0.1,
        "b2": jax.random.normal(keys[7], (1, D_MODEL), jnp.float32) * 0.1,
        "ln1_a": jnp.ones((1, D_MODEL), jnp.float32),
        "ln1_b": jnp.zeros((1, D_MODEL), jnp.float32),
        "ln2_a": jnp.ones((1, D_MODEL), jnp.float32),
        "ln2_b": jnp.zeros((1, D_MODEL), jnp.float32),
    }

    x = jax.random.normal(keys[8], (B, S, D_MODEL), jnp.float32)
    # src_mask: (B, 1, 1, S), mask out the last two positions of batch 1
    mask = jnp.ones((B, 1, 1, S), jnp.float32)
    mask = mask.at[1, 0, 0, -2:].set(0.0)

    # one-time prep (outside the per-call forward path)
    prepped = prepare_params(params)
    bias_stacked = prepare_mask_bias(mask)
    prepped = jax.tree_util.tree_map(jax.block_until_ready, prepped)
    bias_stacked = jax.block_until_ready(bias_stacked)

    out = encoder_block_pallas(x, bias_stacked, prepped)
    out = jax.block_until_ready(out)

    ref = encoder_block_ref(x, mask, params)
    assert out.shape == (B, S, D_MODEL)
    assert jnp.allclose(out, ref, atol=1e-4, rtol=1e-4), "mismatch vs reference"

    print("KERNEL_OK")
</pallas_src>

<mosaic_0001>
module attributes {stable_mosaic.version = 11 : i64} {
  func.func @encoder_block_kernel(%arg0: memref<64x8xf32, #tpu.memory_space<vmem>>, %arg1: memref<16x32xf32, #tpu.memory_space<vmem>>, %arg2: memref<32x96xf32, #tpu.memory_space<vmem>>, %arg3: memref<32x32xf32, #tpu.memory_space<vmem>>, %arg4: memref<32x64xf32, #tpu.memory_space<vmem>>, %arg5: memref<64x32xf32, #tpu.memory_space<vmem>>, %arg6: memref<6x64xf32, #tpu.memory_space<vmem>>, %arg7: memref<16x32xf32, #tpu.memory_space<vmem>>) attributes {dimension_semantics = [], scalar_prefetch = 0 : i64, scratch_operands = 0 : i64, tpu.core_type = #tpu.core_type<tc>} {
    %c0 = arith.constant 0 : index
    %c0_0 = arith.constant 0 : index
    %0 = vector.load %arg1[%c0, %c0_0] : memref<16x32xf32, #tpu.memory_space<vmem>>, vector<16x32xf32>
    %c0_1 = arith.constant 0 : index
    %c0_2 = arith.constant 0 : index
    %1 = vector.load %arg6[%c0_1, %c0_2] : memref<6x64xf32, #tpu.memory_space<vmem>>, vector<6x64xf32>
    %2 = vector.extract_strided_slice %1 {offsets = [0, 0], sizes = [1, 64], strides = [1, 1]} : vector<6x64xf32> to vector<1x64xf32>
    %3 = vector.extract_strided_slice %1 {offsets = [1, 0], sizes = [1, 32], strides = [1, 1]} : vector<6x64xf32> to vector<1x32xf32>
    %4 = vector.extract_strided_slice %1 {offsets = [2, 0], sizes = [1, 32], strides = [1, 1]} : vector<6x64xf32> to vector<1x32xf32>
    %5 = vector.extract_strided_slice %1 {offsets = [3, 0], sizes = [1, 32], strides = [1, 1]} : vector<6x64xf32> to vector<1x32xf32>
    %6 = vector.extract_strided_slice %1 {offsets = [4, 0], sizes = [1, 32], strides = [1, 1]} : vector<6x64xf32> to vector<1x32xf32>
    %7 = vector.extract_strided_slice %1 {offsets = [5, 0], sizes = [1, 32], strides = [1, 1]} : vector<6x64xf32> to vector<1x32xf32>
    %cst = arith.constant dense<0.000000e+00> : vector<16xf32>
    %8 = vector.multi_reduction <add>, %0, %cst [1] : vector<16x32xf32> to vector<16xf32>
    %9 = vector.shape_cast %8 : vector<16xf32> to vector<16x1xf32>
    %cst_3 = arith.constant 3.200000e+01 : f32
    %10 = vector.broadcast %cst_3 : f32 to vector<16x1xf32>
    %11 = arith.divf %9, %10 : vector<16x1xf32>
    %12 = vector.broadcast %11 : vector<16x1xf32> to vector<16x32xf32>
    %13 = arith.subf %0, %12 : vector<16x32xf32>
    %14 = arith.mulf %13, %13 : vector<16x32xf32>
    %cst_4 = arith.constant dense<0.000000e+00> : vector<16xf32>
    %15 = vector.multi_reduction <add>, %14, %cst_4 [1] : vector<16x32xf32> to vector<16xf32>
    %16 = vector.shape_cast %15 : vector<16xf32> to vector<16x1xf32>
    %cst_5 = arith.constant 0.0322580636 : f32
    %17 = vector.broadcast %cst_5 : f32 to vector<16x1xf32>
    %18 = arith.mulf %16, %17 : vector<16x1xf32>
    %19 = math.sqrt %18 : vector<16x1xf32>
    %cst_6 = arith.constant 9.99999997E-7 : f32
    %20 = vector.broadcast %cst_6 : f32 to vector<16x1xf32>
    %21 = arith.addf %19, %20 : vector<16x1xf32>
    %22 = tpu.reciprocal %21 : vector<16x1xf32> -> vector<16x1xf32>
    %23 = vector.broadcast %22 : vector<16x1xf32> to vector<16x32xf32>
    %24 = arith.mulf %13, %23 : vector<16x32xf32>
    %25 = vector.broadcast %4 : vector<1x32xf32> to vector<16x32xf32>
    %26 = arith.mulf %24, %25 : vector<16x32xf32>
    %27 = vector.broadcast %5 : vector<1x32xf32> to vector<16x32xf32>
    %28 = arith.addf %26, %27 : vector<16x32xf32>
    %c0_7 = arith.constant 0 : index
    %c0_8 = arith.constant 0 : index
    %29 = vector.load %arg2[%c0_7, %c0_8] : memref<32x96xf32, #tpu.memory_space<vmem>>, vector<32x96xf32>
    %cst_9 = arith.constant dense<0.000000e+00> : vector<16x96xf32>
    %30 = tpu.matmul %28, %29, %cst_9 {dimension_numbers = #tpu.dot_dimension_numbers<[1], [0], [0], [1], [0, 0, 1, 1], [], []>} : vector<16x32xf32>, vector<32x96xf32>, vector<16x96xf32> -> vector<16x96xf32>
    %31 = vector.extract_strided_slice %30 {offsets = [0, 0], sizes = [16, 32], strides = [1, 1]} : vector<16x96xf32> to vector<16x32xf32>
    %32 = vector.extract_strided_slice %30 {offsets = [0, 32], sizes = [16, 32], strides = [1, 1]} : vector<16x96xf32> to vector<16x32xf32>
    %33 = vector.extract_strided_slice %30 {offsets = [0, 64], sizes = [16, 32], strides = [1, 1]} : vector<16x96xf32> to vector<16x32xf32>
    %c0_10 = arith.constant 0 : index
    %c0_11 = arith.constant 0 : index
    %34 = vector.load %arg3[%c0_10, %c0_11] : memref<32x32xf32, #tpu.memory_space<vmem>>, vector<32x32xf32>
    %35 = vector.extract_strided_slice %31 {offsets = [0, 0], sizes = [8, 8], strides = [1, 1]} : vector<16x32xf32> to vector<8x8xf32>
    %36 = vector.extract_strided_slice %32 {offsets = [0, 0], sizes = [8, 8], strides = [1, 1]} : vector<16x32xf32> to vector<8x8xf32>
    %cst_12 = arith.constant dense<0.000000e+00> : vector<8x8xf32>
    %37 = tpu.matmul %35, %36, %cst_12 {dimension_numbers = #tpu.dot_dimension_numbers<[1], [1], [0], [0], [0, 0, 1, 0], [], []>} : vector<8x8xf32>, vector<8x8xf32>, vector<8x8xf32> -> vector<8x8xf32>
    %38 = vector.extract_strided_slice %31 {offsets = [0, 8], sizes = [8, 8], strides = [1, 1]} : vector<16x32xf32> to vector<8x8xf32>
    %39 = vector.extract_strided_slice %32 {offsets = [0, 8], sizes = [8, 8], strides = [1, 1]} : vector<16x32xf32> to vector<8x8xf32>
    %cst_13 = arith.constant dense<0.000000e+00> : vector<8x8xf32>
    %40 = tpu.matmul %38, %39, %cst_13 {dimension_numbers = #tpu.dot_dimension_numbers<[1], [1], [0], [0], [0, 0, 1, 0], [], []>} : vector<8x8xf32>, vector<8x8xf32>, vector<8x8xf32> -> vector<8x8xf32>
    %41 = vector.extract_strided_slice %31 {offsets = [0, 16], sizes = [8, 8], strides = [1, 1]} : vector<16x32xf32> to vector<8x8xf32>
    %42 = vector.extract_strided_slice %32 {offsets = [0, 16], sizes = [8, 8], strides = [1, 1]} : vector<16x32xf32> to vector<8x8xf32>
    %cst_14 = arith.constant dense<0.000000e+00> : vector<8x8xf32>
    %43 = tpu.matmul %41, %42, %cst_14 {dimension_numbers = #tpu.dot_dimension_numbers<[1], [1], [0], [0], [0, 0, 1, 0], [], []>} : vector<8x8xf32>, vector<8x8xf32>, vector<8x8xf32> -> vector<8x8xf32>
    %44 = vector.extract_strided_slice %31 {offsets = [0, 24], sizes = [8, 8], strides = [1, 1]} : vector<16x32xf32> to vector<8x8xf32>
    %45 = vector.extract_strided_slice %32 {offsets = [0, 24], sizes = [8, 8], strides = [1, 1]} : vector<16x32xf32> to vector<8x8xf32>
    %cst_15 = arith.constant dense<0.000000e+00> : vector<8x8xf32>
    %46 = tpu.matmul %44, %45, %cst_15 {dimension_numbers = #tpu.dot_dimension_numbers<[1], [1], [0], [0], [0, 0, 1, 0], [], []>} : vector<8x8xf32>, vector<8x8xf32>, vector<8x8xf32> -> vector<8x8xf32>
    %47 = vector.extract_strided_slice %31 {offsets = [8, 0], sizes = [8, 8], strides = [1, 1]} : vector<16x32xf32> to vector<8x8xf32>
    %48 = vector.extract_strided_slice %32 {offsets = [8, 0], sizes = [8, 8], strides = [1, 1]} : vector<16x32xf32> to vector<8x8xf32>
    %cst_16 = arith.constant dense<0.000000e+00> : vector<8x8xf32>
    %49 = tpu.matmul %47, %48, %cst_16 {dimension_numbers = #tpu.dot_dimension_numbers<[1], [1], [0], [0], [0, 0, 1, 0], [], []>} : vector<8x8xf32>, vector<8x8xf32>, vector<8x8xf32> -> vector<8x8xf32>
    %50 = vector.extract_strided_slice %31 {offsets = [8, 8], sizes = [8, 8], strides = [1, 1]} : vector<16x32xf32> to vector<8x8xf32>
    %51 = vector.extract_strided_slice %32 {offsets = [8, 8], sizes = [8, 8], strides = [1, 1]} : vector<16x32xf32> to vector<8x8xf32>
    %cst_17 = arith.constant dense<0.000000e+00> : vector<8x8xf32>
    %52 = tpu.matmul %50, %51, %cst_17 {dimension_numbers = #tpu.dot_dimension_numbers<[1], [1], [0], [0], [0, 0, 1, 0], [], []>} : vector<8x8xf32>, vector<8x8xf32>, vector<8x8xf32> -> vector<8x8xf32>
    %53 = vector.extract_strided_slice %31 {offsets = [8, 16], sizes = [8, 8], strides = [1, 1]} : vector<16x32xf32> to vector<8x8xf32>
    %54 = vector.extract_strided_slice %32 {offsets = [8, 16], sizes = [8, 8], strides = [1, 1]} : vector<16x32xf32> to vector<8x8xf32>
    %cst_18 = arith.constant dense<0.000000e+00> : vector<8x8xf32>
    %55 = tpu.matmul %53, %54, %cst_18 {dimension_numbers = #tpu.dot_dimension_numbers<[1], [1], [0], [0], [0, 0, 1, 0], [], []>} : vector<8x8xf32>, vector<8x8xf32>, vector<8x8xf32> -> vector<8x8xf32>
    %56 = vector.extract_strided_slice %31 {offsets = [8, 24], sizes = [8, 8], strides = [1, 1]} : vector<16x32xf32> to vector<8x8xf32>
    %57 = vector.extract_strided_slice %32 {offsets = [8, 24], sizes = [8, 8], strides = [1, 1]} : vector<16x32xf32> to vector<8x8xf32>
    %cst_19 = arith.constant dense<0.000000e+00> : vector<8x8xf32>
    %58 = tpu.matmul %56, %57, %cst_19 {dimension_numbers = #tpu.dot_dimension_numbers<[1], [1], [0], [0], [0, 0, 1, 0], [], []>} : vector<8x8xf32>, vector<8x8xf32>, vector<8x8xf32> -> vector<8x8xf32>
    %59 = tpu.concatenate %37, %40, %43, %46, %49, %52, %55, %58 in 0 : vector<8x8xf32>, vector<8x8xf32>, vector<8x8xf32>, vector<8x8xf32>, vector<8x8xf32>, vector<8x8xf32>, vector<8x8xf32>, vector<8x8xf32> -> vector<64x8xf32>
    %c0_20 = arith.constant 0 : index
    %c0_21 = arith.constant 0 : index
    %60 = vector.load %arg0[%c0_20, %c0_21] : memref<64x8xf32, #tpu.memory_space<vmem>>, vector<64x8xf32>
    %61 = arith.addf %59, %60 : vector<64x8xf32>
    %cst_22 = arith.constant dense<0xFF800000> : vector<64xf32>
    %62 = vector.multi_reduction <maximumf>, %61, %cst_22 [1] : vector<64x8xf32> to vector<64xf32>
    %63 = vector.shape_cast %62 : vector<64xf32> to vector<64x1xf32>
    %64 = vector.broadcast %63 : vector<64x1xf32> to vector<64x8xf32>
    %65 = arith.subf %61, %64 : vector<64x8xf32>
    %66 = math.exp %65 : vector<64x8xf32>
    %cst_23 = arith.constant dense<0.000000e+00> : vector<64xf32>
    %67 = vector.multi_reduction <add>, %66, %cst_23 [1] : vector<64x8xf32> to vector<64xf32>
    %68 = vector.shape_cast %67 : vector<64xf32> to vector<64x1xf32>
    %69 = tpu.reciprocal %68 : vector<64x1xf32> -> vector<64x1xf32>
    %70 = vector.broadcast %69 : vector<64x1xf32> to vector<64x8xf32>
    %71 = arith.mulf %66, %70 : vector<64x8xf32>
    %cst_24 = arith.constant 0.000000e+00 : f32
    %72 = vector.broadcast %cst_24 : f32 to vector<8x32xf32>
    %73 = vector.extract_strided_slice %71 {offsets = [0, 0], sizes = [8, 8], strides = [1, 1]} : vector<64x8xf32> to vector<8x8xf32>
    %74 = vector.extract_strided_slice %33 {offsets = [0, 0], sizes = [8, 8], strides = [1, 1]} : vector<16x32xf32> to vector<8x8xf32>
    %cst_25 = arith.constant dense<0.000000e+00> : vector<8x8xf32>
    %75 = tpu.matmul %73, %74, %cst_25 {dimension_numbers = #tpu.dot_dimension_numbers<[1], [0], [0], [1], [0, 0, 1, 1], [], []>} : vector<8x8xf32>, vector<8x8xf32>, vector<8x8xf32> -> vector<8x8xf32>
    %76 = vector.extract_strided_slice %34 {offsets = [0, 0], sizes = [8, 32], strides = [1, 1]} : vector<32x32xf32> to vector<8x32xf32>
    %cst_26 = arith.constant dense<0.000000e+00> : vector<8x32xf32>
    %77 = tpu.matmul %75, %76, %cst_26 {dimension_numbers = #tpu.dot_dimension_numbers<[1], [0], [0], [1], [0, 0, 1, 1], [], []>} : vector<8x8xf32>, vector<8x32xf32>, vector<8x32xf32> -> vector<8x32xf32>
    %78 = arith.addf %72, %77 : vector<8x32xf32>
    %79 = vector.extract_strided_slice %71 {offsets = [8, 0], sizes = [8, 8], strides = [1, 1]} : vector<64x8xf32> to vector<8x8xf32>
    %80 = vector.extract_strided_slice %33 {offsets = [0, 8], sizes = [8, 8], strides = [1, 1]} : vector<16x32xf32> to vector<8x8xf32>
    %cst_27 = arith.constant dense<0.000000e+00> : vector<8x8xf32>
    %81 = tpu.matmul %79, %80, %cst_27 {dimension_numbers = #tpu.dot_dimension_numbers<[1], [0], [0], [1], [0, 0, 1, 1], [], []>} : vector<8x8xf32>, vector<8x8xf32>, vector<8x8xf32> -> vector<8x8xf32>
    %82 = vector.extract_strided_slice %34 {offsets = [8, 0], sizes = [8, 32], strides = [1, 1]} : vector<32x32xf32> to vector<8x32xf32>
    %cst_28 = arith.constant dense<0.000000e+00> : vector<8x32xf32>
    %83 = tpu.matmul %81, %82, %cst_28 {dimension_numbers = #tpu.dot_dimension_numbers<[1], [0], [0], [1], [0, 0, 1, 1], [], []>} : vector<8x8xf32>, vector<8x32xf32>, vector<8x32xf32> -> vector<8x32xf32>
    %84 = arith.addf %78, %83 : vector<8x32xf32>
    %85 = vector.extract_strided_slice %71 {offsets = [16, 0], sizes = [8, 8], strides = [1, 1]} : vector<64x8xf32> to vector<8x8xf32>
    %86 = vector.extract_strided_slice %33 {offsets = [0, 16], sizes = [8, 8], strides = [1, 1]} : vector<16x32xf32> to vector<8x8xf32>
    %cst_29 = arith.constant dense<0.000000e+00> : vector<8x8xf32>
    %87 = tpu.matmul %85, %86, %cst_29 {dimension_numbers = #tpu.dot_dimension_numbers<[1], [0], [0], [1], [0, 0, 1, 1], [], []>} : vector<8x8xf32>, vector<8x8xf32>, vector<8x8xf32> -> vector<8x8xf32>
    %88 = vector.extract_strided_slice %34 {offsets = [16, 0], sizes = [8, 32], strides = [1, 1]} : vector<32x32xf32> to vector<8x32xf32>
    %cst_30 = arith.constant dense<0.000000e+00> : vector<8x32xf32>
    %89 = tpu.matmul %87, %88, %cst_30 {dimension_numbers = #tpu.dot_dimension_numbers<[1], [0], [0], [1], [0, 0, 1, 1], [], []>} : vector<8x8xf32>, vector<8x32xf32>, vector<8x32xf32> -> vector<8x32xf32>
    %90 = arith.addf %84, %89 : vector<8x32xf32>
    %91 = vector.extract_strided_slice %71 {offsets = [24, 0], sizes = [8, 8], strides = [1, 1]} : vector<64x8xf32> to vector<8x8xf32>
    %92 = vector.extract_strided_slice %33 {offsets = [0, 24], sizes = [8, 8], strides = [1, 1]} : vector<16x32xf32> to vector<8x8xf32>
    %cst_31 = arith.constant dense<0.000000e+00> : vector<8x8xf32>
    %93 = tpu.matmul %91, %92, %cst_31 {dimension_numbers = #tpu.dot_dimension_numbers<[1], [0], [0], [1], [0, 0, 1, 1], [], []>} : vector<8x8xf32>, vector<8x8xf32>, vector<8x8xf32> -> vector<8x8xf32>
    %94 = vector.extract_strided_slice %34 {offsets = [24, 0], sizes = [8, 32], strides = [1, 1]} : vector<32x32xf32> to vector<8x32xf32>
    %cst_32 = arith.constant dense<0.000000e+00> : vector<8x32xf32>
    %95 = tpu.matmul %93, %94, %cst_32 {dimension_numbers = #tpu.dot_dimension_numbers<[1], [0], [0], [1], [0, 0, 1, 1], [], []>} : vector<8x8xf32>, vector<8x32xf32>, vector<8x32xf32> -> vector<8x32xf32>
    %96 = arith.addf %90, %95 : vector<8x32xf32>
    %cst_33 = arith.constant 0.000000e+00 : f32
    %97 = vector.broadcast %cst_33 : f32 to vector<8x32xf32>
    %98 = vector.extract_strided_slice %71 {offsets = [32, 0], sizes = [8, 8], strides = [1, 1]} : vector<64x8xf32> to vector<8x8xf32>
    %99 = vector.extract_strided_slice %33 {offsets = [8, 0], sizes = [8, 8], strides = [1, 1]} : vector<16x32xf32> to vector<8x8xf32>
    %cst_34 = arith.constant dense<0.000000e+00> : vector<8x8xf32>
    %100 = tpu.matmul %98, %99, %cst_34 {dimension_numbers = #tpu.dot_dimension_numbers<[1], [0], [0], [1], [0, 0, 1, 1], [], []>} : vector<8x8xf32>, vector<8x8xf32>, vector<8x8xf32> -> vector<8x8xf32>
    %101 = vector.extract_strided_slice %34 {offsets = [0, 0], sizes = [8, 32], strides = [1, 1]} : vector<32x32xf32> to vector<8x32xf32>
    %cst_35 = arith.constant dense<0.000000e+00> : vector<8x32xf32>
    %102 = tpu.matmul %100, %101, %cst_35 {dimension_numbers = #tpu.dot_dimension_numbers<[1], [0], [0], [1], [0, 0, 1, 1], [], []>} : vector<8x8xf32>, vector<8x32xf32>, vector<8x32xf32> -> vector<8x32xf32>
    %103 = arith.addf %97, %102 : vector<8x32xf32>
    %104 = vector.extract_strided_slice %71 {offsets = [40, 0], sizes = [8, 8], strides = [1, 1]} : vector<64x8xf32> to vector<8x8xf32>
    %105 = vector.extract_strided_slice %33 {offsets = [8, 8], sizes = [8, 8], strides = [1, 1]} : vector<16x32xf32> to vector<8x8xf32>
    %cst_36 = arith.constant dense<0.000000e+00> : vector<8x8xf32>
    %106 = tpu.matmul %104, %105, %cst_36 {dimension_numbers = #tpu.dot_dimension_numbers<[1], [0], [0], [1], [0, 0, 1, 1], [], []>} : vector<8x8xf32>, vector<8x8xf32>, vector<8x8xf32> -> vector<8x8xf32>
    %107 = vector.extract_strided_slice %34 {offsets = [8, 0], sizes = [8, 32], strides = [1, 1]} : vector<32x32xf32> to vector<8x32xf32>
    %cst_37 = arith.constant dense<0.000000e+00> : vector<8x32xf32>
    %108 = tpu.matmul %106, %107, %cst_37 {dimension_numbers = #tpu.dot_dimension_numbers<[1], [0], [0], [1], [0, 0, 1, 1], [], []>} : vector<8x8xf32>, vector<8x32xf32>, vector<8x32xf32> -> vector<8x32xf32>
    %109 = arith.addf %103, %108 : vector<8x32xf32>
    %110 = vector.extract_strided_slice %71 {offsets = [48, 0], sizes = [8, 8], strides = [1, 1]} : vector<64x8xf32> to vector<8x8xf32>
    %111 = vector.extract_strided_slice %33 {offsets = [8, 16], sizes = [8, 8], strides = [1, 1]} : vector<16x32xf32> to vector<8x8xf32>
    %cst_38 = arith.constant dense<0.000000e+00> : vector<8x8xf32>
    %112 = tpu.matmul %110, %111, %cst_38 {dimension_numbers = #tpu.dot_dimension_numbers<[1], [0], [0], [1], [0, 0, 1, 1], [], []>} : vector<8x8xf32>, vector<8x8xf32>, vector<8x8xf32> -> vector<8x8xf32>
    %113 = vector.extract_strided_slice %34 {offsets = [16, 0], sizes = [8, 32], strides = [1, 1]} : vector<32x32xf32> to vector<8x32xf32>
    %cst_39 = arith.constant dense<0.000000e+00> : vector<8x32xf32>
    %114 = tpu.matmul %112, %113, %cst_39 {dimension_numbers = #tpu.dot_dimension_numbers<[1], [0], [0], [1], [0, 0, 1, 1], [], []>} : vector<8x8xf32>, vector<8x32xf32>, vector<8x32xf32> -> vector<8x32xf32>
    %115 = arith.addf %109, %114 : vector<8x32xf32>
    %116 = vector.extract_strided_slice %71 {offsets = [56, 0], sizes = [8, 8], strides = [1, 1]} : vector<64x8xf32> to vector<8x8xf32>
    %117 = vector.extract_strided_slice %33 {offsets = [8, 24], sizes = [8, 8], strides = [1, 1]} : vector<16x32xf32> to vector<8x8xf32>
    %cst_40 = arith.constant dense<0.000000e+00> : vector<8x8xf32>
    %118 = tpu.matmul %116, %117, %cst_40 {dimension_numbers = #tpu.dot_dimension_numbers<[1], [0], [0], [1], [0, 0, 1, 1], [], []>} : vector<8x8xf32>, vector<8x8xf32>, vector<8x8xf32> -> vector<8x8xf32>
    %119 = vector.extract_strided_slice %34 {offsets = [24, 0], sizes = [8, 32], strides = [1, 1]} : vector<32x32xf32> to vector<8x32xf32>
    %cst_41 = arith.constant dense<0.000000e+00> : vector<8x32xf32>
    %120 = tpu.matmul %118, %119, %cst_41 {dimension_numbers = #tpu.dot_dimension_numbers<[1], [0], [0], [1], [0, 0, 1, 1], [], []>} : vector<8x8xf32>, vector<8x32xf32>, vector<8x32xf32> -> vector<8x32xf32>
    %121 = arith.addf %115, %120 : vector<8x32xf32>
    %122 = tpu.concatenate %96, %121 in 0 : vector<8x32xf32>, vector<8x32xf32> -> vector<16x32xf32>
    %123 = arith.addf %0, %122 : vector<16x32xf32>
    %cst_42 = arith.constant dense<0.000000e+00> : vector<16xf32>
    %124 = vector.multi_reduction <add>, %123, %cst_42 [1] : vector<16x32xf32> to vector<16xf32>
    %125 = vector.shape_cast %124 : vector<16xf32> to vector<16x1xf32>
    %cst_43 = arith.constant 3.200000e+01 : f32
    %126 = vector.broadcast %cst_43 : f32 to vector<16x1xf32>
    %127 = arith.divf %125, %126 : vector<16x1xf32>
    %128 = vector.broadcast %127 : vector<16x1xf32> to vector<16x32xf32>
    %129 = arith.subf %123, %128 : vector<16x32xf32>
    %130 = arith.mulf %129, %129 : vector<16x32xf32>
    %cst_44 = arith.constant dense<0.000000e+00> : vector<16xf32>
    %131 = vector.multi_reduction <add>, %130, %cst_44 [1] : vector<16x32xf32> to vector<16xf32>
    %132 = vector.shape_cast %131 : vector<16xf32> to vector<16x1xf32>
    %cst_45 = arith.constant 0.0322580636 : f32
    %133 = vector.broadcast %cst_45 : f32 to vector<16x1xf32>
    %134 = arith.mulf %132, %133 : vector<16x1xf32>
    %135 = math.sqrt %134 : vector<16x1xf32>
    %cst_46 = arith.constant 9.99999997E-7 : f32
    %136 = vector.broadcast %cst_46 : f32 to vector<16x1xf32>
    %137 = arith.addf %135, %136 : vector<16x1xf32>
    %138 = tpu.reciprocal %137 : vector<16x1xf32> -> vector<16x1xf32>
    %139 = vector.broadcast %138 : vector<16x1xf32> to vector<16x32xf32>
    %140 = arith.mulf %129, %139 : vector<16x32xf32>
    %141 = vector.broadcast %6 : vector<1x32xf32> to vector<16x32xf32>
    %142 = arith.mulf %140, %141 : vector<16x32xf32>
    %143 = vector.broadcast %7 : vector<1x32xf32> to vector<16x32xf32>
    %144 = arith.addf %142, %143 : vector<16x32xf32>
    %c0_47 = arith.constant 0 : index
    %c0_48 = arith.constant 0 : index
    %145 = vector.load %arg4[%c0_47, %c0_48] : memref<32x64xf32, #tpu.memory_space<vmem>>, vector<32x64xf32>
    %cst_49 = arith.constant dense<0.000000e+00> : vector<16x64xf32>
    %146 = tpu.matmul %144, %145, %cst_49 {dimension_numbers = #tpu.dot_dimension_numbers<[1], [0], [0], [1], [0, 0, 1, 1], [], []>} : vector<16x32xf32>, vector<32x64xf32>, vector<16x64xf32> -> vector<16x64xf32>
    %147 = vector.broadcast %2 : vector<1x64xf32> to vector<16x64xf32>
    %148 = arith.addf %146, %147 : vector<16x64xf32>
    %cst_50 = arith.constant 0.000000e+00 : f32
    %149 = vector.broadcast %cst_50 : f32 to vector<16x64xf32>
    %150 = arith.maximumf %148, %149 : vector<16x64xf32>
    %c0_51 = arith.constant 0 : index
    %c0_52 = arith.constant 0 : index
    %151 = vector.load %arg5[%c0_51, %c0_52] : memref<64x32xf32, #tpu.memory_space<vmem>>, vector<64x32xf32>
    %cst_53 = arith.constant dense<0.000000e+00> : vector<16x32xf32>
    %152 = tpu.matmul %150, %151, %cst_53 {dimension_numbers = #tpu.dot_dimension_numbers<[1], [0], [0], [1], [0, 0, 1, 1], [], []>} : vector<16x64xf32>, vector<64x32xf32>, vector<16x32xf32> -> vector<16x32xf32>
    %153 = vector.broadcast %3 : vector<1x32xf32> to vector<16x32xf32>
    %154 = arith.addf %152, %153 : vector<16x32xf32>
    %155 = arith.addf %123, %154 : vector<16x32xf32>
    %c0_54 = arith.constant 0 : index
    %c0_55 = arith.constant 0 : index
    %156 = vector.load %arg7[%c0_54, %c0_55] : memref<16x32xf32, #tpu.memory_space<vmem>>, vector<16x32xf32>
    tpu.vector_store %arg7[%c0_54, %c0_55], %155 {strides = array<i32>} : memref<16x32xf32, #tpu.memory_space<vmem>>, vector<16x32xf32>,
    return
  }
}

</mosaic_0001>

<bundles_post_ra>
// kernel: tpu_custom_call.1
= control target key start
LH: loop header
LB: loop body
LE: loop exit
PB: predicated region body
PF: predicated region fallthrough
CT: control target
= control target key end

     0   :  { %vm30_vm0 = vcmask 261120   ;;  %s3139_s0 = inlined_call_operand.vmem [shape: f32[64,8], index: 0, kind: input, shape index: {}]   ;;  %s3140_s1 = inlined_call_operand.vmem [shape: f32[16,32], index: 1, kind: input, shape index: {}]   ;;  %s3141_s2 = inlined_call_operand.vmem [shape: f32[32,96], index: 2, kind: input, shape index: {}]   ;;  %s3142_s3 = inlined_call_operand.vmem [shape: f32[32,32], index: 3, kind: input, shape index: {}]   ;;  %s3143_s4 = inlined_call_operand.vmem [shape: f32[32,64], index: 4, kind: input, shape index: {}]   ;;  %s3144_s5 = inlined_call_operand.vmem [shape: f32[64,32], index: 5, kind: input, shape index: {}]   ;;  %s3145_s6 = inlined_call_operand.vmem [shape: f32[6,64], index: 6, kind: input, shape index: {}]   ;;  %s3146_s7 = inlined_call_operand.hbm [shape: f32[16,32], index: 7, kind: output, shape index: {}]  }
   0x1   :  { %v2803_v0 = vld [vmem:[%s3140_s1] sm:$0xff]  ;;  %v2808_v1 = vld [vmem:[%s3140_s1 + $0x8] sm:$0xff] }
   0x2   :  { %12 = vsyncpa [#allocation3], 0  ;;  %v31_v2 = vsel %vm30_vm0, %v2803_v0, 0.0  ;;  %v34_v3 = vsel %vm30_vm0, %v2808_v1, 0.0  ;;  %v84_v14 = vld [vmem:[%s3141_s2] sm:$0xff]  ;;  %v85_v15 = vld [vmem:[%s3141_s2 + $0x8] sm:$0xff]  ;;  %v72_v30 = vlaneseq }
   0x3   :  { %32 = vadd.xlane.f32.xlu0 %v31_v2  ;;  %v86_v16 = vld [vmem:[%s3141_s2 + $0x10] sm:$0xff]  ;;  %v2624_v17 = vpack.c.bf16 %v85_v15, %v84_v14  ;;  %v87_v18 = vld [vmem:[%s3141_s2 + $0x18] sm:$0xff]  ;;  %v2836_v39 = vld [vmem:[%s3145_s6] sm:$0x3f]  ;;  %v2744_v51 = vmov 0.0   ;;  %vm2745_vm5 = vmmov 0  }
   0x4   :  { %v2628_v19 = vpack.c.bf16 %v87_v18, %v86_v16  ;;  %v2830_v36 = vshrl.u32 %v72_v30, 7  ;;  %2479 = vmatprep.subr.mxu1 %v2744_v51  ;;  %2481 = vmatprep.mubr.msk.f32.mxu1 %vm2745_vm5, %v2744_v51  ;;  %s2746_s6 = smov 120   ;;  %s2747_s13 = smov 88   ;;  %vm176_vm6 = vcmask 64512   ;;  %v797_v62 = vld [vmem:[%s3139_s0 + $0x8] sm:$0xff]  ;;  %vm2253_vm11 = vcmask 523264  }
   0x5   :  { %2625 = vmatprep.subr.bf16.mxu0 %v2624_v17  ;;  %s2748_s14 = smov 96   ;;  %s2749_s15 = smov 112  }
   0x6   :  { %2627 = vmatpush3.bf16.msra.mxu0 %v2624_v17  ;;  %v74_v38 = vsub.s32 2, %v2830_v36  ;;  %v80_v40 = vsub.s32 3, %v2830_v36  ;;  %s2750_s16 = smov 80   ;;  %s2751_s17 = smov 104  }
   0x7   :  { %35 = vadd.xlane.f32.xlu0 %v34_v3  ;;  %2629 = vmatprep.subr.bf16.mxu0 %v2628_v19  ;;  %s2752_s18 = smov 72   ;;  %s2753_s21 = smov 56  }
   0x8   :  { %v75_v41 = vrot.slane %v2836_v39, %v74_v38  ;;  %v81_v44 = vrot.slane %v2836_v39, %v80_v40  ;;  %s2754_s24 = smov 64   ;;  %s2755_s28 = smov 40  }
   0x9   :  { %s2756_s29 = smov 48  }
   0xa   :  { %2631 = vmatpush3.bf16.msra.mxu0 %v2628_v19 }
   0xb   :  { %2474 = vmatprep.subr.mxu0 %v2744_v51 }
  0x90   :  { %v33_v4 = vpop.xlane.xlu0 %32 }
  0x91   :  { %v38_v5 = vmul.f32 0.03125, %v33_v4 }
  0x93   :  { %v40_v6 = vsub.f32 %v2803_v0, %v38_v5 }
  0x94   :  { %v36_v7 = vpop.xlane.xlu0 %35 }
  0x95   :  { %v39_v8 = vmul.f32 0.03125, %v36_v7  ;;  %v42_v9 = vmul.f32 %v40_v6, %v40_v6 }
  0x97   :  { %v41_v10 = vsub.f32 %v2808_v1, %v39_v8  ;;  %v44_v11 = vsel %vm30_vm0, %v42_v9, 0.0 }
  0x98   :  { %45 = vadd.xlane.f32.xlu1 %v44_v11  ;;  %v798_v11 = vld [vmem:[%s3139_s0 + $0x10] sm:$0xff] }
  0x99   :  { %v43_v12 = vmul.f32 %v41_v10, %v41_v10 }
  0x9b   :  { %v47_v13 = vsel %vm30_vm0, %v43_v12, 0.0 }
  0x9c   :  { %48 = vadd.xlane.f32.xlu1 %v47_v13 }
 0x125   :  { %v46_v20 = vpop.xlane.xlu1 %45 }
 0x126   :  { %v50_v21 = vmul.f32 0.032258064, %v46_v20 }
 0x128   :  { %2672 = vrsqrt.f32 %v50_v21  ;;  %vm54_vm1 = vcmp.eq.f32.partialorder %v50_v21, inf  ;;  %v57_v26 = vand.u32 2147483648, %v50_v21  ;;  %vm56_vm2 = vcmp.eq.f32.partialorder %v50_v21, 0.0 }
 0x129   :  { %v49_v22 = vpop.xlane.xlu1 %48 }
 0x12a   :  { %v51_v23 = vmul.f32 0.032258064, %v49_v22 }
 0x12c   :  { %2674 = vrsqrt.f32 %v51_v23  ;;  %vm61_vm3 = vcmp.eq.f32.partialorder %v51_v23, inf  ;;  %v64_v33 = vand.u32 2147483648, %v51_v23  ;;  %vm63_vm4 = vcmp.eq.f32.partialorder %v51_v23, 0.0 }
 0x132   :  { %v2673_v24 = vpop.eup %2672 }
 0x133   :  { %v53_v25 = vmul.f32 %v2673_v24, %v50_v21 }
 0x135   :  { %v55_v27 = vsel %vm54_vm1, %v50_v21, %v53_v25  ;;  %v796_v21 = vld [vmem:[%s3139_s0] sm:$0xff] }
 0x136   :  { %v2675_v28 = vpop.eup %2674  ;;  %v58_v29 = vsel %vm56_vm2, %v57_v26, %v55_v27 }
 0x137   :  { %v60_v31 = vmul.f32 %v2675_v28, %v51_v23  ;;  %v66_v32 = vadd.f32 1e-06, %v58_v29 }
 0x139   :  { %v62_v34 = vsel %vm61_vm3, %v51_v23, %v60_v31  ;;  %2676 = vrcp.f32 %v66_v32  ;;  %v799_v23 = vld [vmem:[%s3139_s0 + $0x18] sm:$0xff] }
 0x13a   :  { %v65_v35 = vsel %vm63_vm4, %v64_v33, %v62_v34 }
 0x13b   :  { %v67_v37 = vadd.f32 1e-06, %v65_v35 }
 0x13d   :  { %2678 = vrcp.f32 %v67_v37 }
 0x143   :  { %v2677_v42 = vpop.eup %2676 }
 0x144   :  { %v70_v43 = vmul.f32 %v2677_v42, %v40_v6 }
 0x146   :  { %v76_v45 = vmul.f32 %v75_v41, %v70_v43 }
 0x147   :  { %v2679_v46 = vpop.eup %2678 }
 0x148   :  { %v71_v47 = vmul.f32 %v2679_v46, %v41_v10  ;;  %v82_v48 = vadd.f32 %v81_v44, %v76_v45 }
 0x14a   :  { %v77_v49 = vmul.f32 %v75_v41, %v71_v47  ;;  %2471 = vmatprep.mubr.msk.f32.mxu0 %vm30_vm0, %v82_v48 }
 0x14c   :  { %v83_v50 = vadd.f32 %v81_v44, %v77_v49 }
 0x14e   :  { %2472 = vmatmul.mubr.msk.f32.vlgmr.msra.gmra.mrb[0].mxu0 %vm30_vm0, %v83_v50 }
 0x14f   :  { %2476 = vmatprep.mubr.msk.f32.mxu0 %vm2745_vm5, %v2744_v51 }
 0x221   :  { %v2849_v52 = vpop.f32.mrb[0].mxu0 }
 0x222   :  { %v2851_v53 = vpop.f32.mrb[1].mxu0 }
 0x223   :  { %251 = vrot.lane.b32.xlu1 %v2851_v53, %s2746_s6  ;;  %253 = vrot.lane.b32.xlu0 %v2851_v53, %s2747_s13 }
 0x227   :  { %174 = vrot.lane.b32.xlu1 %v2851_v53, %s2748_s14  ;;  %329 = vrot.lane.b32.xlu0 %v2851_v53, %s2749_s15 }
 0x22b   :  { %331 = vrot.lane.b32.xlu1 %v2851_v53, %s2750_s16  ;;  %407 = vrot.lane.b32.xlu0 %v2851_v53, %s2751_s17 }
 0x22f   :  { %409 = vrot.lane.b32.xlu1 %v2851_v53, %s2752_s18  ;;  %564 = vrot.lane.b32.xlu0 %v2849_v52, %s2747_s13 }
 0x295   :  { %v252_v54 = vpop.permute.xlu1 %251  ;;  %v254_v55 = vpop.permute.xlu0 %253 }
 0x296   :  { %2480 = vmatpush3.xpose.msk.msra.mxu1 %vm176_vm6, %v254_v55 }
 0x297   :  { %2489 = vmatprep.subr.mxu1 %v2744_v51 }
 0x299   :  { %v175_v56 = vpop.permute.xlu1 %174  ;;  %2482 = vmatmul.mubr.msk.f32.vlgmr.msra.gmra.mrb[0].mxu1 %vm176_vm6, %v252_v54  ;;  %v330_v57 = vpop.permute.xlu0 %329 }
 0x29a   :  { %2475 = vmatpush3.xpose.msk.msra.mxu0 %vm176_vm6, %v175_v56  ;;  %2491 = vmatprep.mubr.msk.f32.mxu1 %vm2745_vm5, %v2744_v51 }
 0x29b   :  { %2484 = vmatprep.subr.mxu0 %v2744_v51 }
 0x29d   :  { %2477 = vmatmul.mubr.msk.f32.vlgmr.msra.gmra.mrb[2].mxu0 %vm176_vm6, %v2851_v53  ;;  %v332_v58 = vpop.permute.xlu1 %331  ;;  %v408_v59 = vpop.permute.xlu0 %407 }
 0x29e   :  { %2485 = vmatpush3.xpose.msk.msra.mxu0 %vm176_vm6, %v332_v58  ;;  %2486 = vmatprep.mubr.msk.f32.mxu0 %vm2745_vm5, %v2744_v51  ;;  %v801_v58 = vld [vmem:[%s3139_s0 + $0x28] sm:$0xff] }
 0x29f   :  { %2494 = vmatprep.subr.mxu0 %v2744_v51 }
 0x2a1   :  { %v410_v60 = vpop.permute.xlu1 %409  ;;  %2487 = vmatmul.mubr.msk.f32.vlgmr.msra.gmra.mrb[4].mxu0 %vm176_vm6, %v330_v57  ;;  %v565_v61 = vpop.permute.xlu0 %564 }
 0x2a2   :  { %2490 = vmatpush3.xpose.msk.msra.mxu1 %vm176_vm6, %v410_v60  ;;  %2496 = vmatprep.mubr.msk.f32.mxu0 %vm2745_vm5, %v2744_v51 }
 0x2a3   :  { %2499 = vmatprep.subr.mxu1 %v2744_v51 }
 0x2a5   :  { %2492 = vmatmul.mubr.msk.f32.vlgmr.msra.gmra.mrb[2].mxu1 %vm176_vm6, %v408_v59 }
 0x2a6   :  { %2500 = vmatpush3.xpose.msk.msra.mxu1 %vm176_vm6, %v565_v61  ;;  %2501 = vmatprep.mubr.msk.f32.mxu1 %vm2745_vm5, %v2744_v51 }
 0x2a7   :  { %2509 = vmatprep.subr.mxu1 %v2744_v51 }
 0x36c   :  { %v325_v63 = vpop.f32.mrb[0].mxu1 }
 0x36d   :  { %v805_v2 = vadd.f32 %v797_v62, %v325_v63  ;;  %v2483_v3 = vpop.f32.mrb[1].mxu1 }
 0x36f   :  { %v815_v4 = vsel %vm176_vm6, %v805_v2, -inf }
 0x370   :  { %v247_v5 = vpop.f32.mrb[2].mxu0  ;;  %816 = vmax.xlane.f32.xlu1 %v815_v4 }
 0x371   :  { %v2478_v6 = vpop.f32.mrb[3].mxu0  ;;  %v804_v22 = vadd.f32 %v796_v21, %v247_v5  ;;  %v2963_v5 = vld [vmem:[%s3142_s3 + $0x8] sm:$0xff] }
 0x373   :  { %v812_v25 = vsel %vm176_vm6, %v804_v22, -inf }
 0x374   :  { %v403_v7 = vpop.f32.mrb[4].mxu0 }
 0x375   :  { %v2488_v8 = vpop.f32.mrb[5].mxu0  ;;  %v806_v12 = vadd.f32 %v798_v11, %v403_v7 }
 0x377   :  { %v818_v13 = vsel %vm176_vm6, %v806_v12, -inf }
 0x378   :  { %v481_v9 = vpop.f32.mrb[2].mxu1 }
 0x379   :  { %v2493_v10 = vpop.f32.mrb[3].mxu1  ;;  %v807_v24 = vadd.f32 %v799_v23, %v481_v9 }
 0x37b   :  { %v821_v26 = vsel %vm176_vm6, %v807_v24, -inf }
 0x381   :  { %562 = vrot.lane.b32.xlu1 %v2849_v52, %s2746_s6 }
 0x385   :  { %720 = vrot.lane.b32.xlu1 %v2849_v52, %s2752_s18 }
 0x389   :  { %976 = vrot.lane.b32.xlu1 %v2851_v53, %s2753_s21 }
 0x3ad   :  { %819 = vmax.xlane.f32.xlu1 %v818_v13 }
 0x3be   :  { %642 = vrot.lane.b32.xlu1 %v2849_v52, %s2750_s16 }
 0x3c2   :  { %640 = vrot.lane.b32.xlu1 %v2849_v52, %s2749_s15 }
 0x3c6   :  { %900 = vrot.lane.b32.xlu1 %v2851_v53, %s2754_s24 }
 0x3fd   :  { %v817_v14 = vpop.xlane.xlu1 %816 }
 0x3fe   :  { %v837_v15 = vsub.f32 %v805_v2, %v817_v14 }
 0x400   :  { %v846_v16 = vmul.f32 1.442695, %v837_v15 }
 0x401   :  { %v563_v17 = vpop.permute.xlu1 %562 }
 0x402   :  { %2680 = vpow2.f32 %v846_v16  ;;  %2502 = vmatmul.mubr.msk.f32.vlgmr.msra.gmra.mrb[4].mxu1 %vm176_vm6, %v563_v17 }
 0x403   :  { %2511 = vmatprep.mubr.msk.f32.mxu1 %vm2745_vm5, %v2744_v51 }
 0x405   :  { %v721_v18 = vpop.permute.xlu1 %720 }
 0x406   :  { %2510 = vmatpush3.xpose.msk.msra.mxu1 %vm176_vm6, %v721_v18 }
 0x407   :  { %2519 = vmatprep.subr.mxu1 %v2744_v51 }
 0x409   :  { %v977_v29 = vpop.permute.xlu1 %976 }
 0x40c   :  { %v2681_v19 = vpop.eup %2680 }
 0x40d   :  { %v863_v20 = vsel %vm176_vm6, %v2681_v19, 0.0 }
 0x40e   :  { %864 = vadd.xlane.f32.xlu0 %v863_v20  ;;  %v800_v20 = vld [vmem:[%s3139_s0 + $0x20] sm:$0xff] }
 0x424   :  { %718 = vrot.lane.b32.xlu0 %v2849_v52, %s2751_s17 }
 0x43a   :  { %v820_v32 = vpop.xlane.xlu1 %819 }
 0x43b   :  { %v838_v33 = vsub.f32 %v806_v12, %v820_v32  ;;  %v169_v32 = vld [vmem:[%s3142_s3] sm:$0xff] }
 0x43d   :  { %v848_v37 = vmul.f32 1.442695, %v838_v33 }
 0x43e   :  { %v643_v40 = vpop.permute.xlu1 %642 }
 0x442   :  { %v641_v47 = vpop.permute.xlu1 %640 }
 0x443   :  { %813 = vmax.xlane.f32.xlu0 %v812_v25  ;;  %v802_v25 = vld [vmem:[%s3139_s0 + $0x30] sm:$0xff] }
 0x446   :  { %v901_v49 = vpop.permute.xlu1 %900 }
 0x447   :  { %822 = vmax.xlane.f32.xlu0 %v821_v26 }
 0x45d   :  { %486 = vrot.lane.b32.xlu0 %v2849_v52, %s2748_s14 }
 0x49b   :  { %v865_v27 = vpop.xlane.xlu0 %864 }
 0x49c   :  { %2682 = vrcp.f32 %v865_v27 }
 0x49f   :  { %v719_v28 = vpop.permute.xlu0 %718 }
 0x4a0   :  { %2512 = vmatmul.mubr.msk.f32.vlgmr.msra.gmra.mrb[6].mxu1 %vm176_vm6, %v719_v28  ;;  %v803_v28 = vld [vmem:[%s3139_s0 + $0x38] sm:$0xff] }
 0x4a1   :  { %2520 = vmatpush3.msra.mxu1 %v977_v29  ;;  %2521 = vmatprep.mubr.msk.f32.mxu1 %vm2745_vm5, %v2744_v51 }
 0x4a2   :  { %2529 = vmatprep.subr.mxu1 %v2744_v51 }
 0x4a6   :  { %v2683_v30 = vpop.eup %2682 }
 0x4a7   :  { %v893_v31 = vmul.f32 %v2683_v30, %v2681_v19 }
 0x4a9   :  { %2522 = vmatmul.mubr.msk.f32.vlgmr.msra.gmra.mrb[8].mxu1 %vm176_vm6, %v893_v31 }
 0x4aa   :  { %2531 = vmatprep.mubr.msk.f32.mxu1 %vm2745_vm5, %v2744_v51  ;;  %2530 = vmatpush3.msra.mxu1 %v169_v32 }
 0x4ab   :  { %2539 = vmatprep.subr.mxu1 %v2744_v51 }
 0x4d0   :  { %v814_v34 = vpop.xlane.xlu0 %813 }
 0x4d1   :  { %v836_v35 = vsub.f32 %v804_v22, %v814_v34 }
 0x4d3   :  { %v844_v38 = vmul.f32 1.442695, %v836_v35 }
 0x4d4   :  { %v823_v41 = vpop.xlane.xlu0 %822 }
 0x4d5   :  { %2684 = vpow2.f32 %v844_v38  ;;  %v839_v42 = vsub.f32 %v807_v24, %v823_v41  ;;  %v636_v43 = vpop.f32.mrb[4].mxu1  ;;  %v3001_v41 = vld [vmem:[%s3142_s3 + $0x10] sm:$0xff] }
 0x4d6   :  { %v2503_v44 = vpop.f32.mrb[5].mxu1  ;;  %2686 = vpow2.f32 %v848_v37  ;;  %v809_v59 = vadd.f32 %v801_v58, %v636_v43 }
 0x4d7   :  { %v850_v45 = vmul.f32 1.442695, %v839_v42 }
 0x4d8   :  { %v487_v46 = vpop.permute.xlu0 %486  ;;  %v827_v60 = vsel %vm176_vm6, %v809_v59, -inf }
 0x4d9   :  { %2688 = vpow2.f32 %v850_v45  ;;  %2495 = vmatpush3.xpose.msk.msra.mxu0 %vm176_vm6, %v487_v46 }
 0x4da   :  { %2504 = vmatprep.subr.mxu0 %v2744_v51 }
 0x4dc   :  { %2497 = vmatmul.mubr.msk.f32.vlgmr.msra.gmra.mrb[6].mxu0 %vm176_vm6, %v2849_v52 }
 0x4dd   :  { %2505 = vmatpush3.xpose.msk.msra.mxu0 %vm176_vm6, %v643_v40  ;;  %2506 = vmatprep.mubr.msk.f32.mxu0 %vm2745_vm5, %v2744_v51 }
 0x4de   :  { %2514 = vmatprep.subr.mxu0 %v2744_v51 }
 0x4df   :  { %v2685_v48 = vpop.eup %2684 }
 0x4e0   :  { %2507 = vmatmul.mubr.msk.f32.vlgmr.msra.gmra.mrb[8].mxu0 %vm176_vm6, %v641_v47  ;;  %v860_v50 = vsel %vm176_vm6, %v2685_v48, 0.0  ;;  %v2687_v54 = vpop.eup %2686  ;;  %v3011_v47 = vld [vmem:[%s3142_s3 + $0x18] sm:$0xff] }
 0x4e1   :  { %861 = vadd.xlane.f32.xlu0 %v860_v50  ;;  %2515 = vmatpush3.msra.mxu0 %v901_v49  ;;  %v866_v56 = vsel %vm176_vm6, %v2687_v54, 0.0 }
 0x4e2   :  { %2516 = vmatprep.mubr.msk.f32.mxu0 %vm2745_vm5, %v2744_v51  ;;  %2524 = vmatprep.subr.mxu0 %v2744_v51 }
 0x4e3   :  { %v2689_v55 = vpop.eup %2688 }
 0x4e4   :  { %v869_v57 = vsel %vm176_vm6, %v2689_v55, 0.0 }
 0x4e5   :  { %867 = vadd.xlane.f32.xlu0 %v866_v56  ;;  %870 = vadd.xlane.f32.xlu1 %v869_v57 }
 0x4f6   :  { %1348 = vrot.lane.b32.xlu1 %v2851_v53, %s2755_s28 }
 0x4fb   :  { %1198 = vrot.lane.b32.xlu0 %v2851_v53, %s2756_s29 }
 0x51a   :  { %828 = vmax.xlane.f32.xlu0 %v827_v60 }
 0x530   :  { %1574 = vrot.lane.b32.xlu0 %v2849_v52, %s2753_s21 }
 0x56e   :  { %v862_v61 = vpop.xlane.xlu0 %861 }
 0x56f   :  { %2690 = vrcp.f32 %v862_v61 }
 0x572   :  { %v868_v62 = vpop.xlane.xlu0 %867  ;;  %v871_v3 = vpop.xlane.xlu1 %870 }
 0x573   :  { %v792_v63 = vpop.f32.mrb[6].mxu1  ;;  %2692 = vrcp.f32 %v868_v62 }
 0x574   :  { %v2513_v2 = vpop.f32.mrb[7].mxu1  ;;  %2694 = vrcp.f32 %v871_v3  ;;  %v811_v29 = vadd.f32 %v803_v28, %v792_v63 }
 0x576   :  { %v1199_v9 = vpop.permute.xlu0 %1198  ;;  %v1349_v12 = vpop.permute.xlu1 %1348  ;;  %v833_v31 = vsel %vm176_vm6, %v811_v29, -inf }
 0x579   :  { %v2691_v4 = vpop.eup %2690 }
 0x57a   :  { %v892_v53 = vmul.f32 %v2691_v4, %v2685_v48 }
 0x57c   :  { %2517 = vmatmul.mubr.msk.f32.vlgmr.msra.gmra.mrb[10].mxu0 %vm176_vm6, %v892_v53  ;;  %v1048_v6 = vpop.f32.mrb[8].mxu1 }
 0x57d   :  { %2525 = vmatpush3.msra.mxu0 %v2963_v5  ;;  %v2523_v7 = vpop.f32.mrb[9].mxu1  ;;  %2526 = vmatprep.mubr.msk.f32.mxu0 %vm2745_vm5, %v2744_v51  ;;  %v2693_v8 = vpop.eup %2692 }
 0x57e   :  { %2534 = vmatprep.subr.mxu0 %v2744_v51  ;;  %v894_v10 = vmul.f32 %v2693_v8, %v2687_v54  ;;  %v2695_v11 = vpop.eup %2694 }
 0x57f   :  { %v895_v13 = vmul.f32 %v2695_v11, %v2689_v55 }
 0x580   :  { %2527 = vmatmul.mubr.msk.f32.vlgmr.msra.gmra.mrb[12].mxu0 %vm176_vm6, %v1048_v6 }
 0x581   :  { %2535 = vmatpush3.msra.mxu0 %v1199_v9  ;;  %2536 = vmatprep.mubr.msk.f32.mxu0 %vm2745_vm5, %v2744_v51 }
 0x582   :  { %2544 = vmatprep.subr.mxu0 %v2744_v51 }
 0x584   :  { %2537 = vmatmul.mubr.msk.f32.vlgmr.msra.gmra.mrb[14].mxu0 %vm176_vm6, %v894_v10 }
 0x585   :  { %2545 = vmatpush3.msra.mxu0 %v1349_v12  ;;  %2546 = vmatprep.mubr.msk.f32.mxu0 %vm2745_vm5, %v2744_v51 }
 0x586   :  { %2554 = vmatprep.subr.mxu0 %v2744_v51 }
 0x588   :  { %2547 = vmatmul.mubr.msk.f32.vlgmr.msra.gmra.mrb[16].mxu0 %vm176_vm6, %v895_v13 }
 0x589   :  { %2556 = vmatprep.mubr.msk.f32.mxu0 %vm2745_vm5, %v2744_v51 }
 0x5a7   :  { %v829_v14 = vpop.xlane.xlu0 %828 }
 0x5a8   :  { %v841_v15 = vsub.f32 %v809_v59, %v829_v14 }
 0x5aa   :  { %v854_v16 = vmul.f32 1.442695, %v841_v15 }
 0x5ab   :  { %v1575_v58 = vpop.permute.xlu0 %1574 }
 0x5ac   :  { %2696 = vpow2.f32 %v854_v16 }
 0x5af   :  { %v558_v17 = vpop.f32.mrb[6].mxu0 }
 0x5b0   :  { %v2498_v18 = vpop.f32.mrb[7].mxu0  ;;  %v808_v23 = vadd.f32 %v800_v20, %v558_v17 }
 0x5b2   :  { %v824_v27 = vsel %vm176_vm6, %v808_v23, -inf }
 0x5b3   :  { %v714_v19 = vpop.f32.mrb[8].mxu0 }
 0x5b4   :  { %v2508_v21 = vpop.f32.mrb[9].mxu0  ;;  %v810_v26 = vadd.f32 %v802_v25, %v714_v19 }
 0x5b6   :  { %v2697_v22 = vpop.eup %2696  ;;  %v830_v30 = vsel %vm176_vm6, %v810_v26, -inf }
 0x5b7   :  { %v875_v24 = vsel %vm176_vm6, %v2697_v22, 0.0 }
 0x5b8   :  { %876 = vadd.xlane.f32.xlu1 %v875_v24 }
 0x5bc   :  { %825 = vmax.xlane.f32.xlu1 %v824_v27 }
 0x5c0   :  { %831 = vmax.xlane.f32.xlu1 %v830_v30 }
 0x5c4   :  { %834 = vmax.xlane.f32.xlu1 %v833_v31 }
 0x645   :  { %v877_v33 = vpop.xlane.xlu1 %876 }
 0x649   :  { %v826_v34 = vpop.xlane.xlu1 %825 }
 0x64a   :  { %v840_v35 = vsub.f32 %v808_v23, %v826_v34 }
 0x64c   :  { %v852_v37 = vmul.f32 1.442695, %v840_v35 }
 0x64d   :  { %v832_v38 = vpop.xlane.xlu1 %831 }
 0x64e   :  { %2698 = vpow2.f32 %v852_v37  ;;  %v842_v40 = vsub.f32 %v810_v26, %v832_v38 }
 0x64f   :  { %v972_v42 = vpop.f32.mrb[10].mxu0  ;;  %2700 = vrcp.f32 %v877_v33 }
 0x650   :  { %v856_v43 = vmul.f32 1.442695, %v842_v40  ;;  %v2518_v44 = vpop.f32.mrb[11].mxu0  ;;  %2532 = vmatmul.mubr.msk.f32.vlgmr.msra.gmra.mrb[10].mxu1 %vm176_vm6, %v972_v42 }
 0x651   :  { %2540 = vmatpush3.msra.mxu1 %v3001_v41  ;;  %2541 = vmatprep.mubr.msk.f32.mxu1 %vm2745_vm5, %v2744_v51  ;;  %v835_v62 = vpop.xlane.xlu1 %834 }
 0x652   :  { %2702 = vpow2.f32 %v856_v43  ;;  %2549 = vmatprep.subr.mxu1 %v2744_v51  ;;  %v843_v63 = vsub.f32 %v811_v29, %v835_v62 }
 0x653   :  { %v1121_v45 = vpop.f32.mrb[12].mxu0 }
 0x654   :  { %v2528_v46 = vpop.f32.mrb[13].mxu0  ;;  %v858_v2 = vmul.f32 1.442695, %v843_v63 }
 0x656   :  { %2704 = vpow2.f32 %v858_v2 }
 0x657   :  { %v1270_v48 = vpop.f32.mrb[14].mxu0 }
 0x658   :  { %v2699_v49 = vpop.eup %2698  ;;  %v2538_v50 = vpop.f32.mrb[15].mxu0  ;;  %2542 = vmatmul.mubr.msk.f32.vlgmr.msra.gmra.mrb[12].mxu1 %vm176_vm6, %v1270_v48 }
 0x659   :  { %2550 = vmatpush3.msra.mxu1 %v3011_v47  ;;  %v872_v54 = vsel %vm176_vm6, %v2699_v49, 0.0  ;;  %2551 = vmatprep.mubr.msk.f32.mxu1 %vm2745_vm5, %v2744_v51  ;;  %v2701_v55 = vpop.eup %2700 }
 0x65a   :  { %873 = vadd.xlane.f32.xlu1 %v872_v54  ;;  %2559 = vmatprep.subr.mxu1 %v2744_v51  ;;  %v897_v61 = vmul.f32 %v2701_v55, %v2697_v22 }
 0x65b   :  { %v1420_v56 = vpop.f32.mrb[16].mxu0 }
 0x65c   :  { %v2703_v57 = vpop.eup %2702  ;;  %v2548_v59 = vpop.f32.mrb[17].mxu0  ;;  %2552 = vmatmul.mubr.msk.f32.vlgmr.msra.gmra.mrb[14].mxu1 %vm176_vm6, %v1420_v56 }
 0x65d   :  { %2560 = vmatpush3.msra.mxu1 %v1575_v58  ;;  %v878_v60 = vsel %vm176_vm6, %v2703_v57, 0.0  ;;  %2561 = vmatprep.mubr.msk.f32.mxu1 %vm2745_vm5, %v2744_v51 }
 0x65e   :  { %879 = vadd.xlane.f32.xlu0 %v878_v60  ;;  %2569 = vmatprep.subr.mxu1 %v2744_v51 }
 0x660   :  { %2562 = vmatmul.mubr.msk.f32.vlgmr.msra.gmra.mrb[16].mxu1 %vm176_vm6, %v897_v61  ;;  %v2705_v3 = vpop.eup %2704 }
 0x661   :  { %2570 = vmatpush3.msra.mxu1 %v169_v32  ;;  %2571 = vmatprep.mubr.msk.f32.mxu1 %vm2745_vm5, %v2744_v51  ;;  %v881_v4 = vsel %vm176_vm6, %v2705_v3, 0.0 }
 0x662   :  { %2579 = vmatprep.subr.mxu1 %v2744_v51 }
 0x66b   :  { %1498 = vrot.lane.b32.xlu1 %v2849_v52, %s2754_s24 }
 0x66f   :  { %1796 = vrot.lane.b32.xlu1 %v2849_v52, %s2756_s29 }
 0x693   :  { %882 = vadd.xlane.f32.xlu1 %v881_v4 }
 0x6a4   :  { %1946 = vrot.lane.b32.xlu1 %v2849_v52, %s2755_s28 }
 0x6e7   :  { %v874_v53 = vpop.xlane.xlu1 %873 }
 0x6e8   :  { %2706 = vrcp.f32 %v874_v53 }
 0x6eb   :  { %v1499_v6 = vpop.permute.xlu1 %1498  ;;  %v880_v11 = vpop.xlane.xlu0 %879 }
 0x6ec   :  { %2555 = vmatpush3.msra.mxu0 %v1499_v6  ;;  %2708 = vrcp.f32 %v880_v11 }
 0x6ed   :  { %2564 = vmatprep.subr.mxu0 %v2744_v51 }
 0x6ef   :  { %v1797_v12 = vpop.permute.xlu1 %1796 }
 0x6f2   :  { %v2707_v7 = vpop.eup %2706 }
 0x6f3   :  { %v896_v8 = vmul.f32 %v2707_v7, %v2699_v49 }
 0x6f5   :  { %2557 = vmatmul.mubr.msk.f32.vlgmr.msra.gmra.mrb[18].mxu0 %vm176_vm6, %v896_v8 }
 0x6f6   :  { %2565 = vmatpush3.msra.mxu0 %v2963_v5  ;;  %2566 = vmatprep.mubr.msk.f32.mxu0 %vm2745_vm5, %v2744_v51  ;;  %v2709_v20 = vpop.eup %2708 }
 0x6f7   :  { %2574 = vmatprep.subr.mxu0 %v2744_v51  ;;  %v898_v24 = vmul.f32 %v2709_v20, %v2703_v57  ;;  %v2243_v20 = vld [vmem:[%s3144_s5 + $0x10] sm:$0xff] }
 0x720   :  { %v883_v13 = vpop.xlane.xlu1 %882 }
 0x721   :  { %2710 = vrcp.f32 %v883_v13  ;;  %v2150_v13 = vld [vmem:[%s3143_s4] sm:$0xff] }
 0x723   :  { %v1194_v9 = vpop.f32.mrb[10].mxu1 }
 0x724   :  { %v1195_v10 = vadd.f32 %v1194_v9, %v1121_v45  ;;  %v2533_v52 = vpop.f32.mrb[11].mxu1  ;;  %v1947_v26 = vpop.permute.xlu1 %1946 }
 0x72b   :  { %v1343_v14 = vpop.f32.mrb[12].mxu1  ;;  %v2711_v25 = vpop.eup %2710 }
 0x72c   :  { %v1347_v15 = vadd.f32 %v1343_v14, %v1195_v10  ;;  %v2543_v16 = vpop.f32.mrb[13].mxu1  ;;  %v2152_v14 = vld [vmem:[%s3143_s4 + $0x10] sm:$0xff] }
 0x72d   :  { %v2153_v16 = vld [vmem:[%s3143_s4 + $0x18] sm:$0xff] }
 0x72f   :  { %v1493_v17 = vpop.f32.mrb[14].mxu1 }
 0x730   :  { %v1497_v18 = vadd.f32 %v1493_v17, %v1347_v15  ;;  %v2553_v19 = vpop.f32.mrb[15].mxu1  ;;  %v2636_v17 = vpack.c.bf16 %v2153_v16, %v2152_v14 }
 0x731   :  { %v2242_v19 = vld [vmem:[%s3144_s5 + $0x8] sm:$0xff] }
 0x732   :  { %v3042_v5 = vadd.f32 %v1497_v18, %v2803_v0  ;;  %v899_v0 = vmul.f32 %v2711_v25, %v2705_v3  ;;  %v2241_v18 = vld [vmem:[%s3144_s5] sm:$0xff]  ;;  %v2246_v25 = vld [vmem:[%s3144_s5 + $0x28] sm:$0xff] }
 0x733   :  { %v1646_v21 = vpop.f32.mrb[16].mxu1 }
 0x734   :  { %v2563_v22 = vpop.f32.mrb[17].mxu1  ;;  %2567 = vmatmul.mubr.msk.f32.vlgmr.msra.gmra.mrb[20].mxu0 %vm176_vm6, %v1646_v21  ;;  %v2098_v23 = vsel %vm30_vm0, %v3042_v5, 0.0  ;;  %v2640_v21 = vpack.c.bf16 %v2242_v19, %v2241_v18 }
 0x735   :  { %2575 = vmatpush3.msra.mxu0 %v1797_v12  ;;  %2099 = vadd.xlane.f32.xlu0 %v2098_v23  ;;  %v2244_v22 = vld [vmem:[%s3144_s5 + $0x18] sm:$0xff] }
 0x736   :  { %2576 = vmatprep.mubr.msk.f32.mxu0 %vm2745_vm5, %v2744_v51  ;;  %2584 = vmatprep.subr.mxu0 %v2744_v51  ;;  %v2644_v23 = vpack.c.bf16 %v2244_v22, %v2243_v20 }
 0x738   :  { %2577 = vmatmul.mubr.msk.f32.vlgmr.msra.gmra.mrb[22].mxu0 %vm176_vm6, %v898_v24  ;;  %v2245_v24 = vld [vmem:[%s3144_s5 + $0x20] sm:$0xff] }
 0x739   :  { %2585 = vmatpush3.msra.mxu0 %v1947_v26  ;;  %2586 = vmatprep.mubr.msk.f32.mxu0 %vm2745_vm5, %v2744_v51  ;;  %v2648_v26 = vpack.c.bf16 %v2246_v25, %v2245_v24 }
 0x73c   :  { %2587 = vmatmul.mubr.msk.f32.vlgmr.msra.gmra.mrb[24].mxu0 %vm176_vm6, %v899_v0 }
 0x7c2   :  { %v2100_v27 = vpop.xlane.xlu0 %2099 }
 0x7c3   :  { %v2104_v28 = vmul.f32 0.03125, %v2100_v27 }
 0x7c5   :  { %v2106_v29 = vsub.f32 %v3042_v5, %v2104_v28 }
 0x7c7   :  { %v2108_v30 = vmul.f32 %v2106_v29, %v2106_v29 }
 0x7c8   :  { %v1570_v31 = vpop.f32.mrb[18].mxu0 }
 0x7c9   :  { %v2558_v32 = vpop.f32.mrb[19].mxu0  ;;  %2572 = vmatmul.mubr.msk.f32.vlgmr.msra.gmra.mrb[18].mxu1 %vm176_vm6, %v1570_v31  ;;  %v2110_v33 = vsel %vm30_vm0, %v2108_v30, 0.0 }
 0x7ca   :  { %2111 = vadd.xlane.f32.xlu0 %v2110_v33  ;;  %2580 = vmatpush3.msra.mxu1 %v3001_v41 }
 0x7cb   :  { %2581 = vmatprep.mubr.msk.f32.mxu1 %vm2745_vm5, %v2744_v51  ;;  %2589 = vmatprep.subr.mxu1 %v2744_v51 }
 0x807   :  { %v1719_v34 = vpop.f32.mrb[20].mxu0 }
 0x808   :  { %v2568_v35 = vpop.f32.mrb[21].mxu0 }
 0x80b   :  { %v1868_v37 = vpop.f32.mrb[22].mxu0 }
 0x80c   :  { %v2578_v38 = vpop.f32.mrb[23].mxu0  ;;  %2582 = vmatmul.mubr.msk.f32.vlgmr.msra.gmra.mrb[20].mxu1 %vm176_vm6, %v1868_v37 }
 0x80d   :  { %2590 = vmatpush3.msra.mxu1 %v3011_v47  ;;  %2591 = vmatprep.mubr.msk.f32.mxu1 %vm2745_vm5, %v2744_v51  ;;  %v2140_v47 = vsub.s32 4, %v2830_v36  ;;  %v2146_v51 = vsub.s32 5, %v2830_v36 }
 0x80e   :  { %2641 = vmatprep.subr.bf16.mxu1 %v2640_v21 }
 0x80f   :  { %v2018_v40 = vpop.f32.mrb[24].mxu0  ;;  %v3069_v54 = vrot.slane %v2836_v39, %v2140_v47  ;;  %v2147_v57 = vrot.slane %v2836_v39, %v2146_v51  ;;  %v2251_v51 = vsub.s32 1, %v2830_v36 }
 0x810   :  { %v2588_v42 = vpop.f32.mrb[25].mxu0  ;;  %2592 = vmatmul.mubr.msk.f32.vlgmr.msra.gmra.mrb[22].mxu1 %vm176_vm6, %v2018_v40  ;;  %v2247_v40 = vld [vmem:[%s3144_s5 + $0x30] sm:$0xff] }
 0x811   :  { %2643 = vmatpush3.bf16.msra.mxu1 %v2640_v21  ;;  %v2248_v42 = vld [vmem:[%s3144_s5 + $0x38] sm:$0xff]  ;;  %s2757_s5 = smov [#allocation2]  }
 0x812   :  { %2645 = vmatprep.subr.bf16.mxu1 %v2644_v23  ;;  %s2344_s16 = sshll.u32 %s2757_s5, 4  ;;  %s2345_s16 = int_to_ptr.vmem [resolvable:$true] %s2344_s16 }
 0x813   :  { %s2720_s0 = scalar_lea.vmem %s2345_s16, 256  ;;  %p2725_p1 = scmp.lt.s32.totalorder %s2345_s16, %s2345_s16 }
 0x814   :  { %p2721_p0 = scmp.ne.s32.totalorder %s2345_s16, %s2720_s0  ;;  %p2726_p2 = scmp.lt.s32.totalorder %s2720_s0, %s2720_s0 }
 0x815   :  { %2647 = vmatpush3.bf16.msra.mxu1 %v2644_v23 }
 0x816   :  { %2649 = vmatprep.subr.bf16.mxu1 %v2648_v26  ;;  %p2727_p3 = por %p2726_p2, %p2725_p1 }
 0x818   :  { %p2728_p4 = pnand %p2727_p3, %p2721_p0 }
 0x819   :  { %2651 = vmatpush3.bf16.msra.mxu1 %v2648_v26 }
 0x857   :  { %v2112_v41 = vpop.xlane.xlu0 %2111 }
 0x858   :  { %v2116_v43 = vmul.f32 0.032258064, %v2112_v41  ;;  %v2652_v41 = vpack.c.bf16 %v2248_v42, %v2247_v40 }
 0x85a   :  { %2712 = vrsqrt.f32 %v2116_v43  ;;  %vm2120_vm7 = vcmp.eq.f32.partialorder %v2116_v43, inf  ;;  %v2123_v46 = vand.u32 2147483648, %v2116_v43  ;;  %vm2122_vm8 = vcmp.eq.f32.partialorder %v2116_v43, 0.0  ;;  %2653 = vmatprep.subr.bf16.mxu1 %v2652_v41 }
 0x85b   :  { %2655 = vmatpush3.bf16.msra.mxu1 %v2652_v41 }
 0x864   :  { %v2713_v44 = vpop.eup %2712 }
 0x865   :  { %v2119_v45 = vmul.f32 %v2713_v44, %v2116_v43 }
 0x867   :  { %v2121_v48 = vsel %vm2120_vm7, %v2116_v43, %v2119_v45  ;;  %v2156_v43 = vsub.s32 0, %v2830_v36 }
 0x868   :  { %v2124_v49 = vsel %vm2122_vm8, %v2123_v46, %v2121_v48 }
 0x869   :  { %v2132_v50 = vadd.f32 1e-06, %v2124_v49  ;;  %v2157_v44 = vrot.slane %v2836_v39, %v2156_v43 }
 0x86b   :  { %2714 = vrcp.f32 %v2132_v50 }
 0x875   :  { %v2715_v55 = vpop.eup %2714 }
 0x876   :  { %v2136_v56 = vmul.f32 %v2715_v55, %v2106_v29 }
 0x878   :  { %v2142_v58 = vmul.f32 %v3069_v54, %v2136_v56 }
 0x87a   :  { %v2148_v59 = vadd.f32 %v2147_v57, %v2142_v58 }
 0x87c   :  { %2602 = vmatprep.mubr.msk.f32.mxu0 %vm30_vm0, %v2148_v59 }
 0x89c   :  { %v1792_v60 = vpop.f32.mrb[18].mxu1 }
 0x89d   :  { %v1793_v61 = vadd.f32 %v1792_v60, %v1719_v34  ;;  %v2573_v62 = vpop.f32.mrb[19].mxu1 }
 0x8df   :  { %v1941_v63 = vpop.f32.mrb[20].mxu1 }
 0x8e0   :  { %v1945_v2 = vadd.f32 %v1941_v63, %v1793_v61  ;;  %v2583_v3 = vpop.f32.mrb[21].mxu1 }
 0x8e3   :  { %v2091_v4 = vpop.f32.mrb[22].mxu1 }
 0x8e4   :  { %v2095_v53 = vadd.f32 %v2091_v4, %v1945_v2  ;;  %v2593_v6 = vpop.f32.mrb[23].mxu1 }
 0x8e6   :  { %v3075_v7 = vadd.f32 %v2095_v53, %v2808_v1  ;;  %v2151_v1 = vld [vmem:[%s3143_s4 + $0x8] sm:$0xff] }
 0x8e7   :  { %v2632_v15 = vpack.c.bf16 %v2151_v1, %v2150_v13 }
 0x8e8   :  { %v2101_v8 = vsel %vm30_vm0, %v3075_v7, 0.0 }
 0x8e9   :  { %2102 = vadd.xlane.f32.xlu1 %v2101_v8  ;;  %2633 = vmatprep.subr.bf16.mxu0 %v2632_v15 }
 0x8ea   :  { %2635 = vmatpush3.bf16.msra.mxu0 %v2632_v15 }
 0x8eb   :  { %2637 = vmatprep.subr.bf16.mxu0 %v2636_v17 }
 0x8ee   :  { %2639 = vmatpush3.bf16.msra.mxu0 %v2636_v17 }
 0x976   :  { %v2103_v9 = vpop.xlane.xlu1 %2102 }
 0x977   :  { %v2105_v10 = vmul.f32 0.03125, %v2103_v9 }
 0x979   :  { %v2107_v52 = vsub.f32 %v3075_v7, %v2105_v10 }
 0x97b   :  { %v2109_v11 = vmul.f32 %v2107_v52, %v2107_v52 }
 0x97d   :  { %v2113_v12 = vsel %vm30_vm0, %v2109_v11, 0.0 }
 0x97e   :  { %2114 = vadd.xlane.f32.xlu0 %v2113_v12 }
 0xa0b   :  { %v2115_v0 = vpop.xlane.xlu0 %2114 }
 0xa0c   :  { %v2117_v27 = vmul.f32 0.032258064, %v2115_v0 }
 0xa0e   :  { %2716 = vrsqrt.f32 %v2117_v27  ;;  %vm2127_vm9 = vcmp.eq.f32.partialorder %v2117_v27, inf  ;;  %v2130_v30 = vand.u32 2147483648, %v2117_v27  ;;  %vm2129_vm10 = vcmp.eq.f32.partialorder %v2117_v27, 0.0 }
 0xa18   :  { %v2717_v28 = vpop.eup %2716 }
 0xa19   :  { %v2126_v29 = vmul.f32 %v2717_v28, %v2117_v27 }
 0xa1b   :  { %v2128_v31 = vsel %vm2127_vm9, %v2117_v27, %v2126_v29 }
 0xa1c   :  { %v2131_v32 = vsel %vm2129_vm10, %v2130_v30, %v2128_v31 }
 0xa1d   :  { %v2133_v33 = vadd.f32 1e-06, %v2131_v32 }
 0xa1f   :  { %2718 = vrcp.f32 %v2133_v33 }
 0xa29   :  { %v2719_v34 = vpop.eup %2718 }
 0xa2a   :  { %v2137_v35 = vmul.f32 %v2719_v34, %v2107_v52 }
 0xa2c   :  { %v2143_v37 = vmul.f32 %v3069_v54, %v2137_v35  ;;  %v2252_v54 = vrot.slane %v2836_v39, %v2251_v51 }
 0xa2e   :  { %v2149_v38 = vadd.f32 %v2147_v57, %v2143_v37 }
 0xa30   :  { %2603 = vmatmul.mubr.msk.f32.vlgmr.msra.gmra.mrb[26].mxu0 %vm30_vm0, %v2149_v38 }
 0xb03   :  { %v2604_v45 = vpop.f32.mrb[26].mxu0 }
 0xb04   :  { %v2236_v46 = vadd.f32 %v2604_v45, %v2157_v44  ;;  %v2230_v48 = vpop.f32.mrb[27].mxu0 }
 0xb05   :  { %v2231_v49 = vadd.f32 %v2230_v48, %v2157_v44 }
 0xb06   :  { %v2240_v47 = vmax.f32 %v2236_v46, 0.0 }
 0xb07   :  { %v2239_v50 = vmax.f32 %v2231_v49, 0.0 }
 0xb09   :  { %2621 = vmatprep.mubr.msk.f32.mxu1 %vm2253_vm11, %v2239_v50 }
 0xb0a   :  { %2622 = vmatmul.mubr.msk.f32.vlgmr.msra.gmra.mrb[24].mxu1 %vm2253_vm11, %v2240_v47 }
 0xbdd   :  { %v2623_v55 = vpop.f32.mrb[24].mxu1 }
 0xbde   :  { %v2332_v56 = vadd.f32 %v2623_v55, %v2252_v54  ;;  %v2326_v57 = vpop.f32.mrb[25].mxu1 }
 0xbdf   :  { %v2327_v58 = vadd.f32 %v2326_v57, %v2252_v54 }
 0xbe0   :  { %v2336_v59 = vadd.f32 %v2332_v56, %v3075_v7 }
 0xbe1   :  { %v2335_v60 = vadd.f32 %v2327_v58, %v3042_v5 }
 0xbe2   :  { %2338 = vst.msk [vmem:[#allocation2 + $0x8] sm:$0xff] %vm30_vm0, %v2336_v59 }
 0xbe3   :  { %2337 = vst.msk [vmem:[#allocation2] sm:$0xff] %vm30_vm0, %v2335_v60 }
 0xbe4   :  { %2731 = shalt.err (!%p2728_p4)
}
 0xbe5   :  { %s2732_s19 = scalar_lea.hbm %s3146_s7, 256 }
 0xbe6   :  { %p2733_p5 = scmp.ne.s32.totalorder %s3146_s7, %s2732_s19  ;;  %p2736_p6 = scmp.lt.u32.totalorder %s2732_s19, %s3146_s7 }
 0xbe8   :  { %p2738_p7 = pnand %p2736_p6, %p2733_p5 }
 0xbea   :  { %2741 = shalt.err (!%p2738_p7)
}
 0xbeb   :  { %s2758_s23 = smov 128   ;;  %s2759_s24 = smov 8  }
 0xbec   :  { %2350 = dma.vmem_to_hbm [thread:$0]  %s2345_s16, 256, %s3146_s7, [#allocation3], %s2758_s23, %s2758_s23, %s2759_s24  }
 0xbed   :  { %2742 = dma.done.wait [#allocation3], 256  }
 0xbee   :  { %2743 = vsyncadd [#allocation3], 4294967040 }
 0xbef   :  { %2354 = vsyncpa [#allocation3], 1 }

</bundles_post_ra>
